<compile_context>
chip_gen: v7x
topology: tpu7x:2x2x1
jax: 0.10.0
libtpu: 0.0.40
codegen_flags: <defaults>
</compile_context>

<pallas_src>
import functools

import jax
import jax.numpy as jnp
import numpy as np
from jax import lax
from jax.experimental import pallas as pl
from jax.experimental.pallas import tpu as pltpu


# ----------------------------------------------------------------------------
# Small helpers
# ----------------------------------------------------------------------------
def _round_up(x, m):
    return ((x + m - 1) // m) * m


def _pick_tile_m(M):
    # M is always a multiple of 64 here (T_pad, B_pad are multiples of 8).
    for cand in (512, 256, 128, 64, 32, 16, 8):
        if M % cand == 0:
            return cand
    return M


def _pick_time_chunk(T):
    if T <= 32:
        return _round_up(T, 8)
    best_c, best_w = 64, _round_up(T, 64) - T
    for cand in (32, 16):
        w = _round_up(T, cand) - T
        if w < best_w:
            best_c, best_w = cand, w
    return best_c


def _compiler_params(resident_bytes, semantics):
    # Size the scoped-VMEM limit from the actual resident footprint, with
    # headroom; clamp to 64 MiB (v7x physical VMEM per TensorCore).
    limit = int(resident_bytes * 1.5) + (4 << 20)
    limit = min(max(limit, 32 << 20), 64 << 20)
    return pltpu.CompilerParams(dimension_semantics=semantics,
                                vmem_limit_bytes=limit)


def _pad_gate_cols(w, H, Hp):
    """(R, 4H) -> (R, 4Hp): pad each of the i/f/g/o gate blocks to Hp columns."""
    R = w.shape[0]
    return jnp.pad(w.reshape(R, 4, H),
                   ((0, 0), (0, 0), (0, Hp - H))).reshape(R, 4 * Hp)


# ----------------------------------------------------------------------------
# Kernel 1: hoisted input projection, gridded over M = T*B rows.
#   gates_dir = sum_p x_p @ W_ih_dir_p + (b_ih + b_hh)_dir
# x tiles / gate tiles are pipelined through the grid; weights and biases use
# constant index_maps so they are fetched once and stay VMEM-resident.
# ----------------------------------------------------------------------------
def _inproj_kernel(*refs, n_x, n_dirs, mm_dtype):
    x_refs = refs[:n_x]
    w_refs = refs[n_x:n_x + n_dirs * n_x]
    b_refs = refs[n_x + n_dirs * n_x:n_x + n_dirs * n_x + n_dirs]
    out_refs = refs[n_x + n_dirs * n_x + n_dirs:]
    xs = [r[...].astype(mm_dtype) for r in x_refs]
    for d in range(n_dirs):
        acc = b_refs[d][...]                     # (1, 4H) f32, broadcast add
        for p in range(n_x):
            acc = acc + jnp.dot(xs[p], w_refs[d * n_x + p][...],
                                preferred_element_type=jnp.float32)
        out_refs[d][...] = acc


def input_projection(x_pieces, params, *, mm_dtype):
    """x_pieces: per-piece (M, D_p) arrays (layer-0: one f32 piece; later
    layers: one bf16 piece per direction).  params: per-direction
    (w_ih_pieces, w_hh, bias).  Returns per-direction (M, 4Hp) f32 gates."""
    M = x_pieces[0].shape[0]
    n_x = len(x_pieces)
    n_dirs = len(params)
    H4 = params[0][2].shape[1]
    TM = _pick_tile_m(M)
    grid = (M // TM,)

    in_specs, args = [], []
    for x in x_pieces:
        in_specs.append(pl.BlockSpec((TM, x.shape[1]), lambda m: (m, 0)))
        args.append(x)
    for (w_pieces, _, _) in params:
        for w in w_pieces:
            in_specs.append(pl.BlockSpec(w.shape, lambda m: (0, 0)))
            args.append(w)
    for (_, _, bias) in params:
        in_specs.append(pl.BlockSpec(bias.shape, lambda m: (0, 0)))
        args.append(bias)
    out_specs = tuple(pl.BlockSpec((TM, H4), lambda m: (m, 0))
                      for _ in range(n_dirs))
    out_shape = tuple(jax.ShapeDtypeStruct((M, H4), jnp.float32)
                      for _ in range(n_dirs))

    # Resident footprint: double-buffered x / gate tiles + resident weights.
    resident = 0
    for x in x_pieces:
        resident += 2 * TM * x.shape[1] * x.dtype.itemsize
    for (w_pieces, _, bias) in params:
        for w in w_pieces:
            resident += w.size * w.dtype.itemsize
        resident += bias.size * 4
    resident += n_dirs * 2 * TM * H4 * 4

    outs = pl.pallas_call(
        functools.partial(_inproj_kernel, n_x=n_x, n_dirs=n_dirs,
                          mm_dtype=mm_dtype),
        grid=grid,
        out_shape=out_shape,
        in_specs=in_specs,
        out_specs=out_specs,
        compiler_params=_compiler_params(resident, ("parallel",)),
    )(*args)
    return tuple(outs)


# ----------------------------------------------------------------------------
# Kernel 2: fused bidirectional packed-LSTM recurrence, time-chunked grid.
# Each grid step processes CT timesteps of BOTH directions; h/c state persists
# across chunks in VMEM scratch; gate/output chunks are pipelined by BlockSpec.
# ----------------------------------------------------------------------------
def _lstm_cell(gates, c_prev, H):
    i = jax.nn.sigmoid(gates[:, 0 * H:1 * H])
    f = jax.nn.sigmoid(gates[:, 1 * H:2 * H])
    g = jnp.tanh(gates[:, 2 * H:3 * H])
    o = jax.nn.sigmoid(gates[:, 3 * H:4 * H])
    c_new = f * c_prev + i * g
    h_new = o * jnp.tanh(c_new)
    return h_new, c_new


def _bilstm_chunk_kernel(lens_ref, gf_ref, gb_ref, whf_ref, whb_ref,
                         outf_ref, outb_ref, hf_sc, cf_sc, hb_sc, cb_sc,
                         *, hidden, chunk, batch, seq_len, mm_dtype, unroll):
    H, CT, B, T = hidden, chunk, batch, seq_len
    c = pl.program_id(0)

    @pl.when(c == 0)
    def _():
        z = jnp.zeros((B, H), jnp.float32)
        hf_sc[...] = z
        cf_sc[...] = z
        hb_sc[...] = z
        cb_sc[...] = z

    lens = lens_ref[...]                         # (B, 1) int32, resident
    wf = whf_ref[...]                            # (H, 4H) bf16, resident
    wb = whb_ref[...]

    def step(lt, carry):
        h_f, c_f, h_b, c_b = carry
        t = c * CT + lt                          # forward global position
        tb = T - 1 - t                           # backward global position
        ltb = CT - 1 - lt                        # backward index in its block

        g_f = gf_ref[lt] + jnp.dot(h_f.astype(mm_dtype), wf,
                                   preferred_element_type=jnp.float32)
        g_b = gb_ref[ltb] + jnp.dot(h_b.astype(mm_dtype), wb,
                                    preferred_element_type=jnp.float32)

        hf_new, cf_new = _lstm_cell(g_f, c_f, H)
        hb_new, cb_new = _lstm_cell(g_b, c_b, H)

        # packed-sequence semantics: freeze state past each sequence's length,
        # emit zeros at padded positions (pad_packed_sequence zero-pads).
        vf = t < lens                            # (B, 1) bool
        vb = tb < lens
        h_f = jnp.where(vf, hf_new, h_f)
        c_f = jnp.where(vf, cf_new, c_f)
        h_b = jnp.where(vb, hb_new, h_b)
        c_b = jnp.where(vb, cb_new, c_b)

        outf_ref[lt] = jnp.where(vf, hf_new, 0.0).astype(outf_ref.dtype)
        outb_ref[ltb] = jnp.where(vb, hb_new, 0.0).astype(outb_ref.dtype)
        return h_f, c_f, h_b, c_b

    carry0 = (hf_sc[...], cf_sc[...], hb_sc[...], cb_sc[...])
    h_f, c_f, h_b, c_b = lax.fori_loop(0, CT, step, carry0, unroll=unroll)
    hf_sc[...] = h_f
    cf_sc[...] = c_f
    hb_sc[...] = h_b
    cb_sc[...] = c_b


def _lstm_chunk_kernel(lens_ref, g_ref, whh_ref, out_ref, h_sc, c_sc,
                       *, hidden, chunk, batch, seq_len, mm_dtype, unroll):
    H, CT, B = hidden, chunk, batch
    c = pl.program_id(0)

    @pl.when(c == 0)
    def _():
        z = jnp.zeros((B, H), jnp.float32)
        h_sc[...] = z
        c_sc[...] = z

    lens = lens_ref[...]
    w = whh_ref[...]

    def step(lt, carry):
        h, cc = carry
        t = c * CT + lt
        g = g_ref[lt] + jnp.dot(h.astype(mm_dtype), w,
                                preferred_element_type=jnp.float32)
        h_new, c_new = _lstm_cell(g, cc, H)
        v = t < lens
        h = jnp.where(v, h_new, h)
        cc = jnp.where(v, c_new, cc)
        out_ref[lt] = jnp.where(v, h_new, 0.0).astype(out_ref.dtype)
        return h, cc

    h, cc = lax.fori_loop(0, CT, step, (h_sc[...], c_sc[...]), unroll=unroll)
    h_sc[...] = h
    c_sc[...] = cc


def lstm_layer(gates, lens2, params, *, seq_len, batch, hidden, chunk,
               mm_dtype, out_dtype, unroll=4):
    """gates: per-direction (T, B, 4H) f32 -> per-direction (T, B, H) output."""
    T, B, H, CT = seq_len, batch, hidden, chunk
    nc = T // CT
    H4 = 4 * H
    n_dirs = len(gates)
    out_isize = jnp.dtype(out_dtype).itemsize

    lens_spec = pl.BlockSpec((B, 1), lambda c: (0, 0))
    gate_fwd_spec = pl.BlockSpec((CT, B, H4), lambda c: (c, 0, 0))
    out_fwd_spec = pl.BlockSpec((CT, B, H), lambda c: (c, 0, 0))
    whh_spec = pl.BlockSpec((H, H4), lambda c: (0, 0))

    resident = (B * 4
                + n_dirs * H * H4 * 2            # resident W_hh (bf16)
                + n_dirs * 2 * CT * B * H4 * 4   # double-buffered gate chunks
                + n_dirs * 2 * CT * B * H * out_isize
                + 4 * B * H * 4)                 # h/c scratch
    cparams = _compiler_params(resident, ("arbitrary",))

    if n_dirs == 2:
        gate_bwd_spec = pl.BlockSpec((CT, B, H4), lambda c: (nc - 1 - c, 0, 0))
        out_bwd_spec = pl.BlockSpec((CT, B, H), lambda c: (nc - 1 - c, 0, 0))
        kernel = functools.partial(_bilstm_chunk_kernel, hidden=H, chunk=CT,
                                   batch=B, seq_len=T, mm_dtype=mm_dtype,
                                   unroll=unroll)
        outs = pl.pallas_call(
            kernel,
            grid=(nc,),
            out_shape=(jax.ShapeDtypeStruct((T, B, H), out_dtype),
                       jax.ShapeDtypeStruct((T, B, H), out_dtype)),
            in_specs=[lens_spec, gate_fwd_spec, gate_bwd_spec,
                      whh_spec, whh_spec],
            out_specs=(out_fwd_spec, out_bwd_spec),
            scratch_shapes=[pltpu.VMEM((B, H), jnp.float32) for _ in range(4)],
            compiler_params=cparams,
        )(lens2, gates[0], gates[1], params[0][1], params[1][1])
        return tuple(outs)

    kernel = functools.partial(_lstm_chunk_kernel, hidden=H, chunk=CT,
                               batch=B, seq_len=T, mm_dtype=mm_dtype,
                               unroll=unroll)
    out = pl.pallas_call(
        kernel,
        grid=(nc,),
        out_shape=jax.ShapeDtypeStruct((T, B, H), out_dtype),
        in_specs=[lens_spec, gate_fwd_spec, whh_spec],
        out_specs=out_fwd_spec,
        scratch_shapes=[pltpu.VMEM((B, H), jnp.float32) for _ in range(2)],
        compiler_params=cparams,
    )(lens2, gates[0], params[0][1])
    return (out,)


# ----------------------------------------------------------------------------
# Module wrapper (parameter setup + glue in plain JAX)
# ----------------------------------------------------------------------------
class EmbsPallas:
    def __init__(self, HPs, key, matmul_dtype=jnp.bfloat16,
                 inter_layer_dtype=jnp.bfloat16):
        size, dim, pre_embs, hidden_dim, dropout, layers, bidirect, zeros = HPs
        self.layers = layers
        self.bidirect = bidirect
        self.zeros = zeros
        self.dropout = dropout            # nn.Dropout: identity at inference
        self.out_dim = hidden_dim
        self.hidden_dim = hidden_dim // 2 if bidirect else hidden_dim
        self.hidden_pad = _round_up(self.hidden_dim, 128)  # lane-aligned gates
        self.mm_dtype = matmul_dtype      # MXU operand dtype (state stays f32)
        self.inter_dtype = inter_layer_dtype
        self.n_dirs = 2 if bidirect else 1

        keys = jax.random.split(key, 2 + 4 * layers * self.n_dirs)

        # Embedding table: random_embedding -> uniform(-sqrt(3/dim), sqrt(3/dim)).
        scale = np.sqrt(3.0 / dim)
        if pre_embs is not None:
            emb = jnp.asarray(pre_embs, jnp.float32)
        else:
            emb = jax.random.uniform(keys[0], (size, dim), jnp.float32,
                                     -scale, scale)
        if zeros:   # set_zeros([0,1,2,3]) applied once at init.
            emb = emb.at[jnp.arange(4)].set(0.0)
        self.emb_table = emb

        # att_layer (unused by forward/get_all_hiddens) kept for parity.
        k_att = 1.0 / np.sqrt(hidden_dim)
        self.att_w = jax.random.uniform(keys[1], (1, hidden_dim), jnp.float32,
                                        -k_att, k_att)

        # LSTM params (PyTorch gate order i, f, g, o; init U(-1/sqrt(H), 1/sqrt(H))).
        # Stored pre-transposed and gate-padded to Hp; matmul operands in
        # mm_dtype, fused bias in f32.  Raw weights kept for the reference.
        H, Hp = self.hidden_dim, self.hidden_pad
        k = 1.0 / np.sqrt(H)
        dirs = ["fwd", "bwd"] if bidirect else ["fwd"]
        self.lstm_params, self.ref_params = [], []
        ki = 2
        for layer in range(layers):
            in_dim = dim if layer == 0 else H * self.n_dirs
            layer_p, layer_r = {}, {}
            for d in dirs:
                w_ih = jax.random.uniform(keys[ki], (4 * H, in_dim),
                                          jnp.float32, -k, k); ki += 1
                w_hh = jax.random.uniform(keys[ki], (4 * H, H),
                                          jnp.float32, -k, k); ki += 1
                b_ih = jax.random.uniform(keys[ki], (4 * H,),
                                          jnp.float32, -k, k); ki += 1
                b_hh = jax.random.uniform(keys[ki], (4 * H,),
                                          jnp.float32, -k, k); ki += 1
                layer_r[d] = (w_ih, w_hh, b_ih, b_hh)

                wih_t = _pad_gate_cols(w_ih.T, H, Hp)          # (in_dim, 4Hp)
                if layer == 0:
                    pieces = (wih_t.astype(matmul_dtype),)
                else:
                    # Split along the concatenated [h_fwd | h_bwd] input dim so
                    # later layers consume the two direction halves directly.
                    pieces = tuple(
                        jnp.pad(wih_t[p * H:(p + 1) * H],
                                ((0, Hp - H), (0, 0))).astype(matmul_dtype)
                        for p in range(self.n_dirs))
                whh_t = jnp.pad(_pad_gate_cols(w_hh.T, H, Hp),
                                ((0, Hp - H), (0, 0))).astype(matmul_dtype)
                bias = _pad_gate_cols((b_ih + b_hh).reshape(1, 4 * H), H, Hp)
                layer_p[d] = (pieces, whh_t, bias)
            self.lstm_params.append(layer_p)
            self.ref_params.append(layer_r)

    def _dir_params(self, layer):
        p = self.lstm_params[layer]
        return [p["fwd"], p["bwd"]] if self.bidirect else [p["fwd"]]

    def __call__(self, inputs, input_lengths):
        B, T = inputs.shape
        H, Hp = self.hidden_dim, self.hidden_pad

        B_pad = _round_up(B, 8)                  # f32 sublane alignment
        CT = _pick_time_chunk(T)                 # recurrence time chunk
        T_pad = _round_up(T, CT)

        # TODO(synk): fuse this gather into the layer-0 input projection
        # (scalar-prefetched ids) to avoid the (T,B,D) f32 HBM round trip.
        ids_tb = jnp.transpose(inputs)           # (T, B): tiny int transpose
        ids_tb = jnp.pad(ids_tb, ((0, T_pad - T), (0, B_pad - B)))
        embs = jnp.take(self.emb_table, ids_tb, axis=0)      # (T_pad,B_pad,D)
        # TODO(synk): nn.Dropout is a no-op here (eval mode); training-mode RNG
        # dropout not implemented.
        lens2 = jnp.pad(input_lengths.astype(jnp.int32),
                        (0, B_pad - B)).reshape(B_pad, 1)

        x_pieces = (embs.reshape(T_pad * B_pad, -1),)        # f32, layer 0
        outs = None
        for layer in range(self.layers):
            params = self._dir_params(layer)
            last = layer == self.layers - 1
            gates2d = input_projection(x_pieces, params, mm_dtype=self.mm_dtype)
            gates = tuple(g.reshape(T_pad, B_pad, 4 * Hp) for g in gates2d)
            outs = lstm_layer(
                gates, lens2, params, seq_len=T_pad, batch=B_pad, hidden=Hp,
                chunk=CT, mm_dtype=self.mm_dtype,
                out_dtype=jnp.float32 if last else self.inter_dtype)
            x_pieces = tuple(o.reshape(T_pad * B_pad, Hp) for o in outs)

        # Strip padding; single direction-concat + batch_first reorder at the end.
        outs = [o[:T, :B, :H] for o in outs]
        out = jnp.concatenate(outs, axis=-1) if self.n_dirs == 2 else outs[0]
        return jnp.transpose(out, (1, 0, 2))     # (B, T, hidden_dim)

    # ------------------------------------------------------------------
    # Pure-JAX reference (lax.scan); op_dtype selects matmul operand dtype.
    # ------------------------------------------------------------------
    def _ref_direction(self, x_tbd, lens, w_ih, w_hh, b_ih, b_hh, reverse,
                       op_dtype):
        T, B, _ = x_tbd.shape
        H = self.hidden_dim
        wih_t = w_ih.T.astype(op_dtype)
        whh_t = w_hh.T.astype(op_dtype)
        bias = (b_ih + b_hh).reshape(1, -1)
        gates_in = (jnp.dot(x_tbd.reshape(T * B, -1).astype(op_dtype), wih_t,
                            preferred_element_type=jnp.float32)
                    + bias).reshape(T, B, -1)
        positions = jnp.arange(T - 1, -1, -1) if reverse else jnp.arange(T)

        def step(carry, pos):
            h, c = carry
            g = gates_in[pos] + jnp.dot(h.astype(op_dtype), whh_t,
                                        preferred_element_type=jnp.float32)
            i = jax.nn.sigmoid(g[:, :H])
            f = jax.nn.sigmoid(g[:, H:2 * H])
            gg = jnp.tanh(g[:, 2 * H:3 * H])
            o = jax.nn.sigmoid(g[:, 3 * H:])
            c_new = f * c + i * gg
            h_new = o * jnp.tanh(c_new)
            valid = (pos < lens)[:, None]
            return ((jnp.where(valid, h_new, h), jnp.where(valid, c_new, c)),
                    jnp.where(valid, h_new, 0.0))

        init = (jnp.zeros((B, H), jnp.float32), jnp.zeros((B, H), jnp.float32))
        _, outs = lax.scan(step, init, positions)
        return outs[::-1] if reverse else outs

    def reference(self, inputs, input_lengths, op_dtype=None):
        op_dtype = self.mm_dtype if op_dtype is None else op_dtype
        embs = jnp.take(self.emb_table, jnp.transpose(inputs), axis=0)
        x = embs.astype(jnp.float32)
        lens = input_lengths.astype(jnp.int32)
        for layer in range(self.layers):
            p = self.ref_params[layer]
            fwd = self._ref_direction(x, lens, *p["fwd"], reverse=False,
                                      op_dtype=op_dtype)
            if self.bidirect:
                bwd = self._ref_direction(x, lens, *p["bwd"], reverse=True,
                                          op_dtype=op_dtype)
                x = jnp.concatenate([fwd, bwd], axis=-1)
            else:
                x = fwd
        return jnp.transpose(x, (1, 0, 2))


if __name__ == "__main__":
    vocab, dim, hidden_dim = 20, 32, 32
    dropout, zeros = 0.5, True

    key = jax.random.PRNGKey(0)
    k_model, k_model2, k_ids = jax.random.split(key, 3)

    B, T = 2, 8
    inputs = jax.random.randint(k_ids, (B, T), 0, vocab, dtype=jnp.int32)
    # pack_padded_sequence requires descending lengths
    input_lengths = jnp.array([8, 5], dtype=jnp.int32)

    # --- Config 1: single bidirectional layer (the module's main path) ------
    HPs = [vocab, dim, None, hidden_dim, dropout, 1, True, zeros]
    model = EmbsPallas(HPs, k_model)
    out = jax.block_until_ready(model(inputs, input_lengths))
    assert out.shape == (B, T, hidden_dim), out.shape

    ref = jax.block_until_ready(model.reference(inputs, input_lengths))
    np.testing.assert_allclose(np.asarray(out), np.asarray(ref),
                               rtol=5e-3, atol=5e-3)
    # Looser-tolerance check against a full-f32-operand reference, so bf16 MXU
    # drift vs the true f32 PyTorch LSTM is bounded (review concern).
    ref32 = jax.block_until_ready(
        model.reference(inputs, input_lengths, op_dtype=jnp.float32))
    np.testing.assert_allclose(np.asarray(out), np.asarray(ref32),
                               rtol=5e-2, atol=5e-2)

    # --- Config 2: two stacked BiLSTM layers (exercises the split-W input ---
    # projection and bf16 inter-layer storage).
    HPs2 = [vocab, dim, None, hidden_dim, dropout, 2, True, zeros]
    model2 = EmbsPallas(HPs2, k_model2)
    out2 = jax.block_until_ready(model2(inputs, input_lengths))
    assert out2.shape == (B, T, hidden_dim), out2.shape
    ref2 = jax.block_until_ready(model2.reference(inputs, input_lengths))
    np.testing.assert_allclose(np.asarray(out2), np.asarray(ref2),
                               rtol=5e-3, atol=5e-3)

    print("KERNEL_OK")
</pallas_src>

<mosaic_0001>
module attributes {stable_mosaic.version = 11 : i64} {
  func.func @_inproj_kernel(%arg0: i32, %arg1: memref<64x32xf32, #tpu.memory_space<vmem>>, %arg2: memref<32x512xbf16, #tpu.memory_space<vmem>>, %arg3: memref<32x512xbf16, #tpu.memory_space<vmem>>, %arg4: memref<1x512xf32, #tpu.memory_space<vmem>>, %arg5: memref<1x512xf32, #tpu.memory_space<vmem>>, %arg6: memref<64x512xf32, #tpu.memory_space<vmem>>, %arg7: memref<64x512xf32, #tpu.memory_space<vmem>>) attributes {dimension_semantics = [#tpu.dimension_semantics<parallel>], iteration_bounds = array<i64: 1>, scalar_prefetch = 0 : i64, scratch_operands = 0 : i64, tpu.core_type = #tpu.core_type<tc>, window_params = [{transform_indices = @transform_0, window_bounds = array<i64: 64, 32>}, {pipeline_mode = #tpu.pipeline_mode<synchronous>, transform_indices = @transform_1, window_bounds = array<i64: 32, 512>}, {pipeline_mode = #tpu.pipeline_mode<synchronous>, transform_indices = @transform_2, window_bounds = array<i64: 32, 512>}, {pipeline_mode = #tpu.pipeline_mode<synchronous>, transform_indices = @transform_3, window_bounds = array<i64: 1, 512>}, {pipeline_mode = #tpu.pipeline_mode<synchronous>, transform_indices = @transform_4, window_bounds = array<i64: 1, 512>}, {transform_indices = @transform_5, window_bounds = array<i64: 64, 512>}, {transform_indices = @transform_6, window_bounds = array<i64: 64, 512>}]} {
    %c0 = arith.constant 0 : index
    %c0_0 = arith.constant 0 : index
    %0 = vector.load %arg1[%c0, %c0_0] : memref<64x32xf32, #tpu.memory_space<vmem>>, vector<64x32xf32>
    %1 = arith.truncf %0 : vector<64x32xf32> to vector<64x32xbf16>
    %c0_1 = arith.constant 0 : index
    %c0_2 = arith.constant 0 : index
    %2 = vector.load %arg4[%c0_1, %c0_2] : memref<1x512xf32, #tpu.memory_space<vmem>>, vector<1x512xf32>
    %c0_3 = arith.constant 0 : index
    %c0_4 = arith.constant 0 : index
    %3 = vector.load %arg2[%c0_3, %c0_4] : memref<32x512xbf16, #tpu.memory_space<vmem>>, vector<32x512xbf16>
    %cst = arith.constant dense<0.000000e+00> : vector<64x512xf32>
    %4 = tpu.matmul %1, %3, %cst {dimension_numbers = #tpu.dot_dimension_numbers<[1], [0], [0], [1], [0, 0, 1, 1], [], []>} : vector<64x32xbf16>, vector<32x512xbf16>, vector<64x512xf32> -> vector<64x512xf32>
    %5 = vector.broadcast %2 : vector<1x512xf32> to vector<64x512xf32>
    %6 = arith.addf %5, %4 : vector<64x512xf32>
    %c0_5 = arith.constant 0 : index
    %c0_6 = arith.constant 0 : index
    %7 = vector.load %arg6[%c0_5, %c0_6] : memref<64x512xf32, #tpu.memory_space<vmem>>, vector<64x512xf32>
    tpu.vector_store %arg6[%c0_5, %c0_6], %6 {strides = array<i32>} : memref<64x512xf32, #tpu.memory_space<vmem>>, vector<64x512xf32>,
    %c0_7 = arith.constant 0 : index
    %c0_8 = arith.constant 0 : index
    %8 = vector.load %arg5[%c0_7, %c0_8] : memref<1x512xf32, #tpu.memory_space<vmem>>, vector<1x512xf32>
    %c0_9 = arith.constant 0 : index
    %c0_10 = arith.constant 0 : index
    %9 = vector.load %arg3[%c0_9, %c0_10] : memref<32x512xbf16, #tpu.memory_space<vmem>>, vector<32x512xbf16>
    %cst_11 = arith.constant dense<0.000000e+00> : vector<64x512xf32>
    %10 = tpu.matmul %1, %9, %cst_11 {dimension_numbers = #tpu.dot_dimension_numbers<[1], [0], [0], [1], [0, 0, 1, 1], [], []>} : vector<64x32xbf16>, vector<32x512xbf16>, vector<64x512xf32> -> vector<64x512xf32>
    %11 = vector.broadcast %8 : vector<1x512xf32> to vector<64x512xf32>
    %12 = arith.addf %11, %10 : vector<64x512xf32>
    %c0_12 = arith.constant 0 : index
    %c0_13 = arith.constant 0 : index
    %13 = vector.load %arg7[%c0_12, %c0_13] : memref<64x512xf32, #tpu.memory_space<vmem>>, vector<64x512xf32>
    tpu.vector_store %arg7[%c0_12, %c0_13], %12 {strides = array<i32>} : memref<64x512xf32, #tpu.memory_space<vmem>>, vector<64x512xf32>,
    return
  }
  func.func @transform_0(%arg0: i32) -> (i32, i32) {
    %c0_i32 = arith.constant 0 : i32
    %c0_i32_0 = arith.constant 0 : i32
    return %arg0, %c0_i32 : i32, i32
  }
  func.func @transform_1(%arg0: i32) -> (i32, i32) {
    %c0_i32 = arith.constant 0 : i32
    %c0_i32_0 = arith.constant 0 : i32
    %c0_i32_1 = arith.constant 0 : i32
    return %c0_i32, %c0_i32_0 : i32, i32
  }
  func.func @transform_2(%arg0: i32) -> (i32, i32) {
    %c0_i32 = arith.constant 0 : i32
    %c0_i32_0 = arith.constant 0 : i32
    %c0_i32_1 = arith.constant 0 : i32
    return %c0_i32, %c0_i32_0 : i32, i32
  }
  func.func @transform_3(%arg0: i32) -> (i32, i32) {
    %c0_i32 = arith.constant 0 : i32
    %c0_i32_0 = arith.constant 0 : i32
    %c0_i32_1 = arith.constant 0 : i32
    return %c0_i32, %c0_i32_0 : i32, i32
  }
  func.func @transform_4(%arg0: i32) -> (i32, i32) {
    %c0_i32 = arith.constant 0 : i32
    %c0_i32_0 = arith.constant 0 : i32
    %c0_i32_1 = arith.constant 0 : i32
    return %c0_i32, %c0_i32_0 : i32, i32
  }
  func.func @transform_5(%arg0: i32) -> (i32, i32) {
    %c0_i32 = arith.constant 0 : i32
    %c0_i32_0 = arith.constant 0 : i32
    return %arg0, %c0_i32 : i32, i32
  }
  func.func @transform_6(%arg0: i32) -> (i32, i32) {
    %c0_i32 = arith.constant 0 : i32
    %c0_i32_0 = arith.constant 0 : i32
    return %arg0, %c0_i32 : i32, i32
  }
}

</mosaic_0001>

<bundles_post_ra>
// kernel: tpu_custom_call.1
= control target key start
LH: loop header
LB: loop body
LE: loop exit
PB: predicated region body
PF: predicated region fallthrough
CT: control target
= control target key end

     0   :  { %12 = vsyncpa [#allocation3], 0  ;;  %s1073_s0 = inlined_call_operand.vmem [shape: f32[64,32], index: 0, kind: input, shape index: {}]   ;;  %s1074_s1 = inlined_call_operand.vmem [shape: bf16[32,512], index: 1, kind: input, shape index: {}]   ;;  %s1075_s2 = inlined_call_operand.hbm [shape: bf16[32,512], index: 2, kind: input, shape index: {}]   ;;  %s1076_s3 = inlined_call_operand.vmem [shape: f32[1,512], index: 3, kind: input, shape index: {}]   ;;  %s1077_s4 = inlined_call_operand.vmem [shape: f32[1,512], index: 4, kind: input, shape index: {}]   ;;  %s1078_s5 = inlined_call_operand.hbm [shape: f32[64,512], index: 5, kind: output, shape index: {0}]   ;;  %s1079_s6 = inlined_call_operand.hbm [shape: f32[64,512], index: 6, kind: output, shape index: {1}]  }
   0x1   :  { %13 = vsyncpa [#allocation4], 0 }
   0x2   :  { %14 = vsyncpa [#allocation7], 0  ;;  %s793_s21 = smov [#allocation2]   ;;  %s721_s25 = scalar_lea.hbm %s1075_s2, 1024 }
   0x3   :  { %s24_s22 = sshll.u32 %s793_s21, 4  ;;  %p722_p0 = scmp.ne.s32.totalorder %s1075_s2, %s721_s25  ;;  %s25_s22 = int_to_ptr.vmem [resolvable:$true] %s24_s22 }
   0x4   :  { %p725_p1 = scmp.lt.u32.totalorder %s721_s25, %s1075_s2 }
   0x6   :  { %p727_p2 = pnand %p725_p1, %p722_p0 }
   0x8   :  { %730 = shalt.err (!%p727_p2)
}
   0x9   :  { %s731_s30 = scalar_lea.vmem %s25_s22, 1024  ;;  %p736_p4 = scmp.lt.s32.totalorder %s25_s22, %s25_s22 }
   0xa   :  { %p732_p3 = scmp.ne.s32.totalorder %s25_s22, %s731_s30  ;;  %p737_p5 = scmp.lt.s32.totalorder %s731_s30, %s731_s30 }
   0xc   :  { %p738_p6 = por %p737_p5, %p736_p4 }
   0xe   :  { %p739_p7 = pnand %p738_p6, %p732_p3 }
  0x10   :  { %742 = shalt.err (!%p739_p7)
}
  0x11   :  { %s794_s7 = smov 256   ;;  %s795_s8 = smov 16  }
  0x12   :  { %30 = dma.hbm_to_vmem [thread:$0]  %s1075_s2, 1024, %s25_s22, [#allocation3], %s794_s7, %s794_s7, %s795_s8  }
  0x13   :  { %787 = dma.done.wait [#allocation3], 1024  }
  0x14   :  { %788 = vsyncadd [#allocation3], 4294966272  ;;  %v796_v0 = vmov 0   ;;  %v697_v1 = vld [vmem:[%s1074_s1 + $0x4] ss:$16 sps:$4 sm:$0xff]   ;;  %v40_v10 = vld [vmem:[%s1073_s0 + $0x8] sm:$0xff]  ;;  %v260_v29 = vlaneseq }
  0x15   :  { %145 = vmatprep.mubr.bf16.mxu0 %v796_v0  ;;  %218 = vmatprep.mubr.bf16.mxu1 %v796_v0  ;;  %v699_v2 = vld [vmem:[%s1074_s1 + $0xc] ss:$16 sps:$4 sm:$0xff]   ;;  %v701_v3 = vld [vmem:[%s1074_s1] ss:$16 sps:$4 sm:$0xff]   ;;  %v702_v4 = vld [vmem:[%s1074_s1 + $0x8] ss:$16 sps:$4 sm:$0xff]  }
  0x16   :  { %113 = vmatprep.subr.bf16.mxu0 %v697_v1  ;;  %186 = vmatprep.subr.bf16.mxu1 %v699_v2  ;;  %v703_v5 = vld [vmem:[%s1074_s1 + $0x24] ss:$16 sps:$4 sm:$0xff]   ;;  %v705_v6 = vld [vmem:[%s1074_s1 + $0x2c] ss:$16 sps:$4 sm:$0xff]   ;;  %v707_v7 = vld [vmem:[%s1074_s1 + $0x20] ss:$16 sps:$4 sm:$0xff]  }
  0x17   :  { %114 = vmatpush1.bf16.msra.mxu0 %v701_v3  ;;  %187 = vmatpush1.bf16.msra.mxu1 %v702_v4  ;;  %v708_v8 = vld [vmem:[%s1074_s1 + $0x28] ss:$16 sps:$4 sm:$0xff]   ;;  %v39_v9 = vld [vmem:[%s1073_s0] sm:$0xff]  ;;  %vm100_vm0 = vcmask 261120   ;;  %v714_v15 = vld [vmem:[#allocation2 + $0xc] ss:$16 sps:$4 sm:$0xff]  }
  0x18   :  { %115 = vmatprep.subr.bf16.mxu0 %v703_v5  ;;  %188 = vmatprep.subr.bf16.mxu1 %v705_v6  ;;  %v47_v11 = vpack.c.bf16 %v40_v10, %v39_v9  ;;  %v711_v12 = vld [vmem:[#allocation2 + $0x4] ss:$16 sps:$4 sm:$0xff]   ;;  %v709_v13 = vld [vmem:[#allocation2] ss:$16 sps:$4 sm:$0xff]   ;;  %v712_v14 = vld [vmem:[#allocation2 + $0x8] ss:$16 sps:$4 sm:$0xff]  }
  0x19   :  { %v41_v16 = vld [vmem:[%s1073_s0 + $0x10] sm:$0xff]  ;;  %v42_v17 = vld [vmem:[%s1073_s0 + $0x18] sm:$0xff]  ;;  %v43_v23 = vld [vmem:[%s1073_s0 + $0x20] sm:$0xff]  ;;  %v928_v30 = vshrl.u32 %v260_v29, 7 }
  0x1a   :  { %v717_v18 = vld [vmem:[#allocation2 + $0x24] ss:$16 sps:$4 sm:$0xff]   ;;  %v715_v19 = vld [vmem:[#allocation2 + $0x20] ss:$16 sps:$4 sm:$0xff]   ;;  %v718_v20 = vld [vmem:[#allocation2 + $0x28] ss:$16 sps:$4 sm:$0xff]   ;;  %v48_v22 = vpack.c.bf16 %v42_v17, %v41_v16 }
  0x1b   :  { %116 = vmatpush1.bf16.msra.mxu0 %v707_v7  ;;  %189 = vmatpush1.bf16.msra.mxu1 %v708_v8  ;;  %v720_v21 = vld [vmem:[#allocation2 + $0x2c] ss:$16 sps:$4 sm:$0xff]   ;;  %v45_v26 = vld [vmem:[%s1073_s0 + $0x30] sm:$0xff]  ;;  %v262_v31 = vsub.s32 0, %v928_v30  ;;  %v270_v32 = vsub.s32 2, %v928_v30  ;;  %v266_v34 = vsub.s32 1, %v928_v30 }
  0x1c   :  { %393 = vmatprep.subr.bf16.mxu0 %v711_v12  ;;  %466 = vmatprep.subr.bf16.mxu1 %v714_v15  ;;  %v44_v24 = vld [vmem:[%s1073_s0 + $0x28] sm:$0xff]  ;;  %v46_v27 = vld [vmem:[%s1073_s0 + $0x38] sm:$0xff]  ;;  %v51_v33 = vld [vmem:[%s1076_s3] sm:$0xf]  ;;  %v274_v35 = vsub.s32 3, %v928_v30  ;;  %s797_s3 = smov [#allocation5]  }
  0x1d   :  { %v49_v25 = vpack.c.bf16 %v44_v24, %v43_v23  ;;  %v50_v28 = vpack.c.bf16 %v46_v27, %v45_v26  ;;  %v939_v36 = vrot.slane %v51_v33, %v262_v31  ;;  %v943_v37 = vrot.slane %v51_v33, %v270_v32  ;;  %s629_s17 = sshll.u32 %s797_s3, 4  ;;  %s986_s17 = int_to_ptr.vmem [resolvable:$true] %s629_s17 }
  0x1e   :  { %665 = vmatmul.mubr.msk.bf16.vlgmr.msra.gmra.mrb[0].mxu0 %vm100_vm0, %v47_v11  ;;  %669 = vmatmul.mubr.msk.bf16.vlgmr.msra.gmra.mrb[0].mxu1 %vm100_vm0, %v47_v11  ;;  %v947_v38 = vrot.slane %v51_v33, %v266_v34  ;;  %v951_v39 = vrot.slane %v51_v33, %v274_v35  ;;  %p748_p9 = scmp.lt.s32.totalorder %s986_s17, %s986_s17 }
  0x1f   :  { %394 = vmatpush1.bf16.msra.mxu0 %v709_v13  ;;  %467 = vmatpush1.bf16.msra.mxu1 %v712_v14 }
  0x20   :  { %155 = vmatprep.mubr.bf16.mxu0 %v796_v0  ;;  %228 = vmatprep.mubr.bf16.mxu1 %v796_v0 }
  0x21   :  { %395 = vmatprep.subr.bf16.mxu0 %v717_v18  ;;  %468 = vmatprep.subr.bf16.mxu1 %v720_v21 }
  0x23   :  { %396 = vmatpush1.bf16.msra.mxu0 %v715_v19  ;;  %469 = vmatpush1.bf16.msra.mxu1 %v718_v20 }
  0x26   :  { %666 = vmatmul.mubr.msk.bf16.gmra.mrb[4].mxu0 %vm100_vm0, %v48_v22  ;;  %670 = vmatmul.mubr.msk.bf16.gmra.mrb[4].mxu1 %vm100_vm0, %v48_v22 }
  0x27   :  { %165 = vmatprep.mubr.bf16.mxu0 %v796_v0  ;;  %238 = vmatprep.mubr.bf16.mxu1 %v796_v0 }
  0x2e   :  { %667 = vmatmul.mubr.msk.bf16.gmra.mrb[8].mxu0 %vm100_vm0, %v49_v25  ;;  %671 = vmatmul.mubr.msk.bf16.gmra.mrb[8].mxu1 %vm100_vm0, %v49_v25 }
  0x2f   :  { %175 = vmatprep.mubr.bf16.mxu0 %v796_v0  ;;  %248 = vmatprep.mubr.bf16.mxu1 %v796_v0 }
  0x36   :  { %668 = vmatmul.mubr.msk.bf16.gmra.mrb[12].mxu0 %vm100_vm0, %v50_v28  ;;  %672 = vmatmul.mubr.msk.bf16.gmra.mrb[12].mxu1 %vm100_vm0, %v50_v28 }
  0x37   :  { %425 = vmatprep.mubr.bf16.mxu0 %v796_v0  ;;  %498 = vmatprep.mubr.bf16.mxu1 %v796_v0 }
  0x3e   :  { %681 = vmatmul.mubr.msk.bf16.vlgmr.msra.gmra.mrb[16].mxu0 %vm100_vm0, %v47_v11  ;;  %685 = vmatmul.mubr.msk.bf16.vlgmr.msra.gmra.mrb[16].mxu1 %vm100_vm0, %v47_v11 }
  0x3f   :  { %435 = vmatprep.mubr.bf16.mxu0 %v796_v0  ;;  %508 = vmatprep.mubr.bf16.mxu1 %v796_v0 }
  0x46   :  { %682 = vmatmul.mubr.msk.bf16.gmra.mrb[20].mxu0 %vm100_vm0, %v48_v22  ;;  %686 = vmatmul.mubr.msk.bf16.gmra.mrb[20].mxu1 %vm100_vm0, %v48_v22 }
  0x47   :  { %445 = vmatprep.mubr.bf16.mxu0 %v796_v0  ;;  %518 = vmatprep.mubr.bf16.mxu1 %v796_v0 }
  0x4e   :  { %683 = vmatmul.mubr.msk.bf16.gmra.mrb[24].mxu0 %vm100_vm0, %v49_v25  ;;  %687 = vmatmul.mubr.msk.bf16.gmra.mrb[24].mxu1 %vm100_vm0, %v49_v25 }
  0x4f   :  { %455 = vmatprep.mubr.bf16.mxu0 %v796_v0  ;;  %528 = vmatprep.mubr.bf16.mxu1 %v796_v0 }
  0x56   :  { %684 = vmatmul.mubr.msk.bf16.gmra.mrb[28].mxu0 %vm100_vm0, %v50_v28  ;;  %688 = vmatmul.mubr.msk.bf16.gmra.mrb[28].mxu1 %vm100_vm0, %v50_v28 }
  0xf1   :  { %v147_v40 = vpop.f32.mrb[0].mxu0  ;;  %v220_v41 = vpop.f32.mrb[0].mxu1 }
  0xf2   :  { %v280_v42 = vadd.f32 %v939_v36, %v147_v40  ;;  %v282_v43 = vadd.f32 %v943_v37, %v220_v41  ;;  %v149_v44 = vpop.f32.mrb[1].mxu0  ;;  %v222_v45 = vpop.f32.mrb[1].mxu1 }
  0xf3   :  { %v281_v46 = vadd.f32 %v947_v38, %v149_v44  ;;  %v283_v47 = vadd.f32 %v951_v39, %v222_v45  ;;  %v151_v48 = vpop.f32.mrb[2].mxu0  ;;  %v224_v49 = vpop.f32.mrb[2].mxu1 }
  0xf4   :  { %312 = vst [vmem:[#allocation5] sm:$0xff] %v280_v42  ;;  %314 = vst [vmem:[#allocation5 + $0x10] sm:$0xff] %v282_v43  ;;  %v284_v50 = vadd.f32 %v939_v36, %v151_v48  ;;  %v286_v51 = vadd.f32 %v943_v37, %v224_v49  ;;  %v153_v52 = vpop.f32.mrb[3].mxu0  ;;  %v226_v53 = vpop.f32.mrb[3].mxu1  ;;  %v344_v43 = vld [vmem:[%s1077_s4] sm:$0xf] }
  0xf5   :  { %313 = vst [vmem:[#allocation5 + $0x8] sm:$0xff] %v281_v46  ;;  %315 = vst [vmem:[#allocation5 + $0x18] sm:$0xff] %v283_v47  ;;  %v285_v54 = vadd.f32 %v947_v38, %v153_v52  ;;  %v287_v55 = vadd.f32 %v951_v39, %v226_v53  ;;  %s743_s4 = scalar_lea.vmem %s986_s17, 4096 }
  0xf6   :  { %316 = vst [vmem:[#allocation5 + $0x20] sm:$0xff] %v284_v50  ;;  %318 = vst [vmem:[#allocation5 + $0x30] sm:$0xff] %v286_v51  ;;  %v1000_v50 = vrot.slane %v344_v43, %v266_v34  ;;  %p744_p8 = scmp.ne.s32.totalorder %s986_s17, %s743_s4  ;;  %p749_p10 = scmp.lt.s32.totalorder %s743_s4, %s743_s4 }
  0xf7   :  { %317 = vst [vmem:[#allocation5 + $0x28] sm:$0xff] %v285_v54  ;;  %319 = vst [vmem:[#allocation5 + $0x38] sm:$0xff] %v287_v55 }
  0xf8   :  { %p750_p11 = por %p749_p10, %p748_p9 }
  0xf9   :  { %v157_v56 = vpop.f32.mrb[4].mxu0  ;;  %v230_v57 = vpop.f32.mrb[4].mxu1 }
  0xfa   :  { %v288_v58 = vadd.f32 %v939_v36, %v157_v56  ;;  %v290_v59 = vadd.f32 %v943_v37, %v230_v57  ;;  %v159_v60 = vpop.f32.mrb[5].mxu0  ;;  %v232_v61 = vpop.f32.mrb[5].mxu1  ;;  %p751_p12 = pnand %p750_p11, %p744_p8 }
  0xfb   :  { %v289_v62 = vadd.f32 %v947_v38, %v159_v60  ;;  %v291_v63 = vadd.f32 %v951_v39, %v232_v61  ;;  %v161_v0 = vpop.f32.mrb[6].mxu0  ;;  %v234_v1 = vpop.f32.mrb[6].mxu1 }
  0xfc   :  { %320 = vst [vmem:[#allocation5 + $0x40] sm:$0xff] %v288_v58  ;;  %322 = vst [vmem:[#allocation5 + $0x50] sm:$0xff] %v290_v59  ;;  %v292_v2 = vadd.f32 %v939_v36, %v161_v0  ;;  %v294_v3 = vadd.f32 %v943_v37, %v234_v1  ;;  %v163_v4 = vpop.f32.mrb[7].mxu0  ;;  %v236_v5 = vpop.f32.mrb[7].mxu1 }
  0xfd   :  { %321 = vst [vmem:[#allocation5 + $0x48] sm:$0xff] %v289_v62  ;;  %323 = vst [vmem:[#allocation5 + $0x58] sm:$0xff] %v291_v63  ;;  %v293_v6 = vadd.f32 %v947_v38, %v163_v4  ;;  %v295_v7 = vadd.f32 %v951_v39, %v236_v5 }
  0xfe   :  { %324 = vst [vmem:[#allocation5 + $0x60] sm:$0xff] %v292_v2  ;;  %326 = vst [vmem:[#allocation5 + $0x70] sm:$0xff] %v294_v3 }
  0xff   :  { %325 = vst [vmem:[#allocation5 + $0x68] sm:$0xff] %v293_v6  ;;  %327 = vst [vmem:[#allocation5 + $0x78] sm:$0xff] %v295_v7 }
 0x101   :  { %v167_v8 = vpop.f32.mrb[8].mxu0  ;;  %v240_v9 = vpop.f32.mrb[8].mxu1 }
 0x102   :  { %v296_v10 = vadd.f32 %v939_v36, %v167_v8  ;;  %v298_v11 = vadd.f32 %v943_v37, %v240_v9  ;;  %v169_v12 = vpop.f32.mrb[9].mxu0  ;;  %v242_v13 = vpop.f32.mrb[9].mxu1 }
 0x103   :  { %v297_v14 = vadd.f32 %v947_v38, %v169_v12  ;;  %v299_v15 = vadd.f32 %v951_v39, %v242_v13  ;;  %v171_v16 = vpop.f32.mrb[10].mxu0  ;;  %v244_v17 = vpop.f32.mrb[10].mxu1 }
 0x104   :  { %328 = vst [vmem:[#allocation5 + $0x80] sm:$0xff] %v296_v10  ;;  %330 = vst [vmem:[#allocation5 + $0x90] sm:$0xff] %v298_v11  ;;  %v300_v18 = vadd.f32 %v939_v36, %v171_v16  ;;  %v302_v19 = vadd.f32 %v943_v37, %v244_v17  ;;  %v173_v20 = vpop.f32.mrb[11].mxu0  ;;  %v246_v21 = vpop.f32.mrb[11].mxu1 }
 0x105   :  { %329 = vst [vmem:[#allocation5 + $0x88] sm:$0xff] %v297_v14  ;;  %331 = vst [vmem:[#allocation5 + $0x98] sm:$0xff] %v299_v15  ;;  %v301_v22 = vadd.f32 %v947_v38, %v173_v20  ;;  %v303_v23 = vadd.f32 %v951_v39, %v246_v21 }
 0x106   :  { %332 = vst [vmem:[#allocation5 + $0xa0] sm:$0xff] %v300_v18  ;;  %334 = vst [vmem:[#allocation5 + $0xb0] sm:$0xff] %v302_v19 }
 0x107   :  { %333 = vst [vmem:[#allocation5 + $0xa8] sm:$0xff] %v301_v22  ;;  %335 = vst [vmem:[#allocation5 + $0xb8] sm:$0xff] %v303_v23 }
 0x109   :  { %v177_v24 = vpop.f32.mrb[12].mxu0  ;;  %v250_v25 = vpop.f32.mrb[12].mxu1 }
 0x10a   :  { %v304_v26 = vadd.f32 %v939_v36, %v177_v24  ;;  %v306_v27 = vadd.f32 %v943_v37, %v250_v25  ;;  %v179_v28 = vpop.f32.mrb[13].mxu0  ;;  %v252_v29 = vpop.f32.mrb[13].mxu1 }
 0x10b   :  { %v305_v33 = vadd.f32 %v947_v38, %v179_v28  ;;  %v307_v40 = vadd.f32 %v951_v39, %v252_v29  ;;  %v181_v41 = vpop.f32.mrb[14].mxu0  ;;  %v254_v42 = vpop.f32.mrb[14].mxu1 }
 0x10c   :  { %336 = vst [vmem:[#allocation5 + $0xc0] sm:$0xff] %v304_v26  ;;  %338 = vst [vmem:[#allocation5 + $0xd0] sm:$0xff] %v306_v27  ;;  %v308_v44 = vadd.f32 %v939_v36, %v181_v41  ;;  %v310_v45 = vadd.f32 %v943_v37, %v254_v42  ;;  %v183_v46 = vpop.f32.mrb[15].mxu0  ;;  %v256_v47 = vpop.f32.mrb[15].mxu1  ;;  %v992_v36 = vrot.slane %v344_v43, %v262_v31 }
 0x10d   :  { %337 = vst [vmem:[#allocation5 + $0xc8] sm:$0xff] %v305_v33  ;;  %339 = vst [vmem:[#allocation5 + $0xd8] sm:$0xff] %v307_v40  ;;  %v309_v48 = vadd.f32 %v947_v38, %v183_v46  ;;  %v311_v49 = vadd.f32 %v951_v39, %v256_v47  ;;  %v996_v37 = vrot.slane %v344_v43, %v270_v32 }
 0x10e   :  { %340 = vst [vmem:[#allocation5 + $0xe0] sm:$0xff] %v308_v44  ;;  %342 = vst [vmem:[#allocation5 + $0xf0] sm:$0xff] %v310_v45  ;;  %v1004_v38 = vrot.slane %v344_v43, %v274_v35 }
 0x10f   :  { %341 = vst [vmem:[#allocation5 + $0xe8] sm:$0xff] %v309_v48  ;;  %343 = vst [vmem:[#allocation5 + $0xf8] sm:$0xff] %v311_v49 }
 0x110   :  { %754 = shalt.err (!%p751_p12)
}
 0x111   :  { %s755_s22 = scalar_lea.hbm %s1078_s5, 4096 }
 0x112   :  { %p756_p13 = scmp.ne.s32.totalorder %s1078_s5, %s755_s22  ;;  %p759_p0 = scmp.lt.u32.totalorder %s755_s22, %s1078_s5 }
 0x114   :  { %p761_p1 = pnand %p759_p0, %p756_p13 }
 0x116   :  { %764 = shalt.err (!%p761_p1)
}
 0x117   :  { %s798_s27 = smov 512   ;;  %s799_s28 = smov 32   ;;  %v427_v30 = vpop.f32.mrb[16].mxu0  ;;  %v500_v31 = vpop.f32.mrb[16].mxu1 }
 0x118   :  { %635 = dma.vmem_to_hbm [thread:$0]  %s986_s17, 4096, %s1078_s5, [#allocation4], %s798_s27, %s798_s27, %s799_s28   ;;  %v560_v32 = vadd.f32 %v992_v36, %v427_v30  ;;  %v562_v34 = vadd.f32 %v996_v37, %v500_v31  ;;  %v429_v35 = vpop.f32.mrb[17].mxu0  ;;  %v502_v39 = vpop.f32.mrb[17].mxu1 }
 0x119   :  { %v561_v51 = vadd.f32 %v1000_v50, %v429_v35  ;;  %v563_v52 = vadd.f32 %v1004_v38, %v502_v39  ;;  %v431_v53 = vpop.f32.mrb[18].mxu0  ;;  %v504_v54 = vpop.f32.mrb[18].mxu1  ;;  %s800_s5 = smov [#allocation6]  }
 0x11a   :  { %592 = vst [vmem:[#allocation6] sm:$0xff] %v560_v32  ;;  %594 = vst [vmem:[#allocation6 + $0x10] sm:$0xff] %v562_v34  ;;  %v564_v55 = vadd.f32 %v992_v36, %v431_v53  ;;  %v566_v56 = vadd.f32 %v996_v37, %v504_v54  ;;  %v433_v57 = vpop.f32.mrb[19].mxu0  ;;  %v506_v58 = vpop.f32.mrb[19].mxu1  ;;  %s641_s30 = sshll.u32 %s800_s5, 4  ;;  %s642_s30 = int_to_ptr.vmem [resolvable:$true] %s641_s30 }
 0x11b   :  { %593 = vst [vmem:[#allocation6 + $0x8] sm:$0xff] %v561_v51  ;;  %595 = vst [vmem:[#allocation6 + $0x18] sm:$0xff] %v563_v52  ;;  %v565_v59 = vadd.f32 %v1000_v50, %v433_v57  ;;  %v567_v60 = vadd.f32 %v1004_v38, %v506_v58  ;;  %v437_v61 = vpop.f32.mrb[20].mxu0  ;;  %v510_v62 = vpop.f32.mrb[20].mxu1  ;;  %s765_s7 = scalar_lea.vmem %s642_s30, 4096  ;;  %p770_p3 = scmp.lt.s32.totalorder %s642_s30, %s642_s30 }
 0x11c   :  { %596 = vst [vmem:[#allocation6 + $0x20] sm:$0xff] %v564_v55  ;;  %598 = vst [vmem:[#allocation6 + $0x30] sm:$0xff] %v566_v56  ;;  %v568_v63 = vadd.f32 %v992_v36, %v437_v61  ;;  %v570_v0 = vadd.f32 %v996_v37, %v510_v62  ;;  %v439_v1 = vpop.f32.mrb[21].mxu0  ;;  %v512_v2 = vpop.f32.mrb[21].mxu1  ;;  %p766_p2 = scmp.ne.s32.totalorder %s642_s30, %s765_s7  ;;  %p771_p4 = scmp.lt.s32.totalorder %s765_s7, %s765_s7 }
 0x11d   :  { %597 = vst [vmem:[#allocation6 + $0x28] sm:$0xff] %v565_v59  ;;  %599 = vst [vmem:[#allocation6 + $0x38] sm:$0xff] %v567_v60  ;;  %v569_v3 = vadd.f32 %v1000_v50, %v439_v1  ;;  %v571_v4 = vadd.f32 %v1004_v38, %v512_v2  ;;  %v441_v5 = vpop.f32.mrb[22].mxu0  ;;  %v514_v6 = vpop.f32.mrb[22].mxu1 }
 0x11e   :  { %600 = vst [vmem:[#allocation6 + $0x40] sm:$0xff] %v568_v63  ;;  %602 = vst [vmem:[#allocation6 + $0x50] sm:$0xff] %v570_v0  ;;  %v572_v7 = vadd.f32 %v992_v36, %v441_v5  ;;  %v574_v8 = vadd.f32 %v996_v37, %v514_v6  ;;  %v443_v9 = vpop.f32.mrb[23].mxu0  ;;  %v516_v10 = vpop.f32.mrb[23].mxu1  ;;  %p772_p5 = por %p771_p4, %p770_p3 }
 0x11f   :  { %601 = vst [vmem:[#allocation6 + $0x48] sm:$0xff] %v569_v3  ;;  %603 = vst [vmem:[#allocation6 + $0x58] sm:$0xff] %v571_v4  ;;  %v573_v11 = vadd.f32 %v1000_v50, %v443_v9  ;;  %v575_v12 = vadd.f32 %v1004_v38, %v516_v10 }
 0x120   :  { %604 = vst [vmem:[#allocation6 + $0x60] sm:$0xff] %v572_v7  ;;  %606 = vst [vmem:[#allocation6 + $0x70] sm:$0xff] %v574_v8  ;;  %p773_p6 = pnand %p772_p5, %p766_p2 }
 0x121   :  { %605 = vst [vmem:[#allocation6 + $0x68] sm:$0xff] %v573_v11  ;;  %607 = vst [vmem:[#allocation6 + $0x78] sm:$0xff] %v575_v12  ;;  %v447_v13 = vpop.f32.mrb[24].mxu0  ;;  %v520_v14 = vpop.f32.mrb[24].mxu1 }
 0x122   :  { %v576_v15 = vadd.f32 %v992_v36, %v447_v13  ;;  %v578_v16 = vadd.f32 %v996_v37, %v520_v14  ;;  %v449_v17 = vpop.f32.mrb[25].mxu0  ;;  %v522_v18 = vpop.f32.mrb[25].mxu1 }
 0x123   :  { %v577_v19 = vadd.f32 %v1000_v50, %v449_v17  ;;  %v579_v20 = vadd.f32 %v1004_v38, %v522_v18  ;;  %v451_v21 = vpop.f32.mrb[26].mxu0  ;;  %v524_v22 = vpop.f32.mrb[26].mxu1 }
 0x124   :  { %608 = vst [vmem:[#allocation6 + $0x80] sm:$0xff] %v576_v15  ;;  %610 = vst [vmem:[#allocation6 + $0x90] sm:$0xff] %v578_v16  ;;  %v580_v23 = vadd.f32 %v992_v36, %v451_v21  ;;  %v582_v24 = vadd.f32 %v996_v37, %v524_v22  ;;  %v453_v25 = vpop.f32.mrb[27].mxu0  ;;  %v526_v26 = vpop.f32.mrb[27].mxu1 }
 0x125   :  { %609 = vst [vmem:[#allocation6 + $0x88] sm:$0xff] %v577_v19  ;;  %611 = vst [vmem:[#allocation6 + $0x98] sm:$0xff] %v579_v20  ;;  %v581_v27 = vadd.f32 %v1000_v50, %v453_v25  ;;  %v583_v28 = vadd.f32 %v1004_v38, %v526_v26 }
 0x126   :  { %612 = vst [vmem:[#allocation6 + $0xa0] sm:$0xff] %v580_v23  ;;  %614 = vst [vmem:[#allocation6 + $0xb0] sm:$0xff] %v582_v24 }
 0x127   :  { %613 = vst [vmem:[#allocation6 + $0xa8] sm:$0xff] %v581_v27  ;;  %615 = vst [vmem:[#allocation6 + $0xb8] sm:$0xff] %v583_v28 }
 0x129   :  { %v457_v29 = vpop.f32.mrb[28].mxu0  ;;  %v530_v33 = vpop.f32.mrb[28].mxu1 }
 0x12a   :  { %v584_v40 = vadd.f32 %v992_v36, %v457_v29  ;;  %v586_v41 = vadd.f32 %v996_v37, %v530_v33  ;;  %v459_v42 = vpop.f32.mrb[29].mxu0  ;;  %v532_v43 = vpop.f32.mrb[29].mxu1 }
 0x12b   :  { %v585_v44 = vadd.f32 %v1000_v50, %v459_v42  ;;  %v587_v45 = vadd.f32 %v1004_v38, %v532_v43  ;;  %v461_v46 = vpop.f32.mrb[30].mxu0  ;;  %v534_v47 = vpop.f32.mrb[30].mxu1 }
 0x12c   :  { %616 = vst [vmem:[#allocation6 + $0xc0] sm:$0xff] %v584_v40  ;;  %618 = vst [vmem:[#allocation6 + $0xd0] sm:$0xff] %v586_v41  ;;  %v588_v48 = vadd.f32 %v992_v36, %v461_v46  ;;  %v590_v49 = vadd.f32 %v996_v37, %v534_v47  ;;  %v463_v30 = vpop.f32.mrb[31].mxu0  ;;  %v536_v31 = vpop.f32.mrb[31].mxu1 }
 0x12d   :  { %617 = vst [vmem:[#allocation6 + $0xc8] sm:$0xff] %v585_v44  ;;  %619 = vst [vmem:[#allocation6 + $0xd8] sm:$0xff] %v587_v45  ;;  %v589_v32 = vadd.f32 %v1000_v50, %v463_v30  ;;  %v591_v34 = vadd.f32 %v1004_v38, %v536_v31 }
 0x12e   :  { %620 = vst [vmem:[#allocation6 + $0xe0] sm:$0xff] %v588_v48  ;;  %622 = vst [vmem:[#allocation6 + $0xf0] sm:$0xff] %v590_v49 }
 0x12f   :  { %621 = vst [vmem:[#allocation6 + $0xe8] sm:$0xff] %v589_v32  ;;  %623 = vst [vmem:[#allocation6 + $0xf8] sm:$0xff] %v591_v34 }
 0x130   :  { %776 = shalt.err (!%p773_p6)
}
 0x131   :  { %s777_s10 = scalar_lea.hbm %s1079_s6, 4096 }
 0x132   :  { %p778_p7 = scmp.ne.s32.totalorder %s1079_s6, %s777_s10  ;;  %p781_p8 = scmp.lt.u32.totalorder %s777_s10, %s1079_s6 }
 0x134   :  { %p783_p9 = pnand %p781_p8, %p778_p7 }
 0x136   :  { %786 = shalt.err (!%p783_p9)
}
 0x137   :  { %647 = dma.vmem_to_hbm [thread:$0]  %s642_s30, 4096, %s1079_s6, [#allocation7], %s798_s27, %s798_s27, %s799_s28  }
 0x138   :  { %789 = dma.done.wait [#allocation4], 4096  }
 0x139   :  { %790 = vsyncadd [#allocation4], 4294963200 }
 0x13a   :  { %791 = dma.done.wait [#allocation7], 4096  }
 0x13b   :  { %792 = vsyncadd [#allocation7], 4294963200 }
 0x13c   :  { %654 = vsyncpa [#allocation3], 1 }
 0x13d   :  { %655 = vsyncpa [#allocation4], 1 }
 0x13e   :  { %656 = vsyncpa [#allocation7], 1 }

</bundles_post_ra>
